<compile_context>
chip_gen: v5e
topology: v5e:2x2
jax: 0.10.0
libtpu: 0.0.40
codegen_flags: <defaults>
</compile_context>

<pallas_src>
import jax
import jax.numpy as jnp
from jax.experimental import pallas as pl
from jax.experimental.pallas import tpu as pltpu

_TARGET_IN_BLOCK_BYTES = 1 << 20  # ~1 MiB input block; x2 double buffering everywhere.


def _make_avg_kernel(inv_segments):
    """Kernel over one (TB, S, TF) tile: mean over the segment axis."""

    def kernel(x_ref, o_ref):
        # Sum over segments in f32 (sublane-direction reduction), scale by a
        # compile-time 1/S constant, cast back to the output dtype.
        acc = jnp.sum(x_ref[...], axis=1, keepdims=True, dtype=jnp.float32)
        o_ref[...] = (acc * inv_segments).astype(o_ref.dtype)

    return kernel


def _pick_feature_tile(F):
    """Largest lane-dense tile (multiple of 128, <= 2048) that divides F."""
    for cand in (2048, 1024, 512, 256, 128):
        if F % cand == 0:
            return cand
    return None


def _avg_consensus_pallas(x):
    B, S, F = x.shape
    TF = _pick_feature_tile(F)
    if TF is None:
        # F not a multiple of 128: lane-dense Pallas tiling would need masked
        # stores; XLA's fused reduction is already at roofline for this case.
        return jnp.mean(x.astype(jnp.float32), axis=1, keepdims=True).astype(x.dtype)

    itemsize = jnp.dtype(x.dtype).itemsize
    bytes_per_batch_row = S * TF * itemsize
    TB = max(1, min(B, _TARGET_IN_BLOCK_BYTES // max(1, bytes_per_batch_row)))
    # Make sure there are >= 2 grid steps so megacore (v7x) can shard the work.
    if B > 1 and pl.cdiv(B, TB) * (F // TF) < 2:
        TB = pl.cdiv(B, 2)

    grid = (pl.cdiv(B, TB), F // TF)
    kernel = _make_avg_kernel(1.0 / float(S))

    return pl.pallas_call(
        kernel,
        out_shape=jax.ShapeDtypeStruct((B, 1, F), x.dtype),
        grid=grid,
        # Block last-two dims: S equals the full array dim, TF is a multiple
        # of 128, so the (8, 128) constraint is satisfied and output stores
        # are lane-dense (unmasked).
        in_specs=[pl.BlockSpec((TB, S, TF), lambda b, f: (b, 0, f))],
        out_specs=pl.BlockSpec((TB, 1, TF), lambda b, f: (b, 0, f)),
        compiler_params=pltpu.CompilerParams(
            dimension_semantics=("parallel", "parallel")
        ),
    )(x)


def consensus_module_forward(x, consensus_type="avg", dim=1):
    """Pallas equivalent of ConsensusModule(consensus_type).forward(x).

    x: jnp array of shape [B, S, F]. Like the PyTorch AvgSegmentConsensus,
    the reduction is over dim=1 regardless of the stored `dim` attribute.
    """
    if consensus_type == "rnn":
        consensus_type = "identity"

    if consensus_type == "identity":
        # Pure no-op: do not burn an HBM->VMEM->HBM round trip on a copy.
        return x

    assert consensus_type == "avg", f"unsupported consensus_type {consensus_type}"
    return _avg_consensus_pallas(x)


if __name__ == "__main__":
    key = jax.random.PRNGKey(0)

    # Small but lane-aligned shapes so the Pallas path is exercised.
    B, S, F = 4, 8, 256  # batch, num_segments, features
    x = jax.random.normal(key, (B, S, F), dtype=jnp.float32)

    # 'avg' path (Pallas kernel: sum-in-f32 * 1/S over the segment axis).
    out_avg = jax.block_until_ready(consensus_module_forward(x, consensus_type="avg"))
    ref_avg = jnp.mean(x, axis=1, keepdims=True)
    assert out_avg.shape == (B, 1, F), out_avg.shape
    assert jnp.allclose(out_avg, ref_avg, atol=1e-5, rtol=1e-5)

    # 'identity' (and 'rnn') path: returned as-is, no kernel launch.
    out_id = jax.block_until_ready(consensus_module_forward(x, consensus_type="identity"))
    assert out_id.shape == x.shape
    assert jnp.allclose(out_id, x)

    # Non-lane-aligned feature dim exercises the jnp.mean fallback.
    x_small = jax.random.normal(key, (2, 8, 48), dtype=jnp.float32)
    out_small = jax.block_until_ready(consensus_module_forward(x_small, "avg"))
    assert jnp.allclose(out_small, jnp.mean(x_small, axis=1, keepdims=True),
                        atol=1e-5, rtol=1e-5)

    print("KERNEL_OK")
</pallas_src>

<mosaic_0001>
module attributes {stable_mosaic.version = 11 : i64} {
  func.func @kernel(%arg0: i32, %arg1: i32, %arg2: memref<2x8x256xf32, #tpu.memory_space<vmem>>, %arg3: memref<2x1x256xf32, #tpu.memory_space<vmem>>) attributes {dimension_semantics = [#tpu.dimension_semantics<parallel>, #tpu.dimension_semantics<parallel>], iteration_bounds = array<i64: 2, 1>, scalar_prefetch = 0 : i64, scratch_operands = 0 : i64, tpu.core_type = #tpu.core_type<tc>, window_params = [{transform_indices = @transform_0, window_bounds = array<i64: 2, 8, 256>}, {transform_indices = @transform_1, window_bounds = array<i64: 2, 1, 256>}]} {
    %c0 = arith.constant 0 : index
    %c0_0 = arith.constant 0 : index
    %c0_1 = arith.constant 0 : index
    %0 = vector.load %arg2[%c0, %c0_0, %c0_1] : memref<2x8x256xf32, #tpu.memory_space<vmem>>, vector<2x8x256xf32>
    %cst = arith.constant dense<0.000000e+00> : vector<2x256xf32>
    %1 = vector.multi_reduction <add>, %0, %cst [1] : vector<2x8x256xf32> to vector<2x256xf32>
    %2 = vector.shape_cast %1 : vector<2x256xf32> to vector<2x1x256xf32>
    %cst_2 = arith.constant 1.250000e-01 : f32
    %3 = vector.broadcast %cst_2 : f32 to vector<2x1x256xf32>
    %4 = arith.mulf %2, %3 : vector<2x1x256xf32>
    %c0_3 = arith.constant 0 : index
    %c0_4 = arith.constant 0 : index
    %c0_5 = arith.constant 0 : index
    %5 = vector.load %arg3[%c0_3, %c0_4, %c0_5] : memref<2x1x256xf32, #tpu.memory_space<vmem>>, vector<2x1x256xf32>
    tpu.vector_store %arg3[%c0_3, %c0_4, %c0_5], %4 {strides = array<i32>} : memref<2x1x256xf32, #tpu.memory_space<vmem>>, vector<2x1x256xf32>,
    return
  }
  func.func @transform_0(%arg0: i32, %arg1: i32) -> (i32, i32, i32) {
    %c0_i32 = arith.constant 0 : i32
    %c0_i32_0 = arith.constant 0 : i32
    return %arg0, %c0_i32, %arg1 : i32, i32, i32
  }
  func.func @transform_1(%arg0: i32, %arg1: i32) -> (i32, i32, i32) {
    %c0_i32 = arith.constant 0 : i32
    %c0_i32_0 = arith.constant 0 : i32
    return %arg0, %c0_i32, %arg1 : i32, i32, i32
  }
}

</mosaic_0001>

<bundles_post_ra>
// kernel: tpu_custom_call.1
= control target key start
LH: loop header
LB: loop body
LE: loop exit
PB: predicated region body
PF: predicated region fallthrough
CT: control target
= control target key end

     0   :  { %6 = vsyncpa [#allocation3], 0  ;;  %s647_s0 = inlined_call_operand.hbm [shape: f32[4,8,256], index: 0, kind: input, shape index: {}]   ;;  %s648_s1 = inlined_call_operand.hbm [shape: f32[4,1,256], index: 1, kind: output, shape index: {}]  }
   0x1   :  { %8 = vsyncpa [#allocation3 + $0x1], 0 }
   0x2   :  { %9 = vsyncpa [#allocation4], 0 }
   0x3   :  { %11 = vsyncpa [#allocation4 + $0x1], 0  ;;  %s526_s6 = smov 0   ;;  %s528_s7 = smov 0  }
   0x4   :  { %s530_s8 = smov 0   ;;  %s532_s9 = smov 0  }
   0x5   :  { %s534_s10 = smov 0   ;;  %s536_s11 = smov 0  }
   0x6 LB: > { %s313_s12 = sadd.s32 4294967295, %s510_s11   ;;  %s314_s13 = sadd.s32 4294967294, %s510_s11   ;;  %s510_s11 = sphi %s536_s11, %s17_s11   ;;  %s506_s10 = sphi %s534_s10, %s657_s10   ;;  %s502_s9 = sphi %s532_s9, %s656_s9   ;;  %s498_s8 = sphi %s530_s8, %s655_s8   ;;  %s494_s7 = sphi %s528_s7, %s654_s7   ;;  %s490_s6 = sphi %s526_s6, %s653_s6  }
   0x7   : > { %s29_s14 = sadd.s32 1, %s506_s10  ;;  %s38_s15 = sadd.s32 1, %s498_s8 }
   0x8   : > { %p31_p0 = scmp.ge.s32.totalorder %s29_s14, 2  ;;  %p45_p1 = scmp.ne.s32.totalorder %s498_s8, %s494_s7 }
   0x9   : > { %p46_p2 = scmp.eq.s32.totalorder %s510_s11, 0  ;;  %p51_p3 = scmp.ne.s32.totalorder %s494_s7, %s490_s6 }
   0xa   : > { %s659_s14 = smov (%p31_p0, %s29_s14), 0  ;;  %p52_p5 = scmp.eq.s32.totalorder %s313_s12, 0 }
   0xb   : > { %p567_p4 = por %p46_p2, %p45_p1  ;;  %s33_s17 = ssub.s32 %s506_s10, %s659_s14 }
   0xc   : > { %p77_p6 = scmp.eq.s32.totalorder %s313_s12, 1  ;;  %p36_p7 = scmp.eq.s32.totalorder %s33_s17, 0 }
   0xd   : > { %p573_p8 = por %p52_p5, %p51_p3  ;;  %p83_p10 = scmp.eq.s32.totalorder %s314_s13, 1 }
   0xe   : > { %p577_p9 = por %p77_p6, %p45_p1  ;;  %p316_p12 = scmp.ge.s32.totalorder %s510_s11, 2 }
   0xf   : > { %s582_s20 = scalar_select %p36_p7, %s498_s8, %s38_s15  }
  0x10   : > { %p584_p11 = por %p83_p10, %p51_p3  ;;  %p344_p13 = scmp.lt.s32.totalorder %s510_s11, 2 }
  0x11   : > { %s103_s22 = sand.u32 1, %s498_s8   ;;  %s330_s24 = sshll.u32 %s506_s10, 5 }
  0x12   : > { %s317_s23 = sshll.u32 %s103_s22, 5  ;;  %s115_s27 = scalar_lea.hbm %s647_s0, %s330_s24 }
  0x13   : > { %s107_s28 = scalar_lea.vmem [#allocation2], %s317_s23  ;;  %s116_s30 = sshll.u32 %s115_s27, 4  ;;  %s117_s30 = int_to_ptr.hbm [resolvable:$true] %s116_s30 }
  0x14   : > { %s118_s29 = sshll.u32 %s107_s28, 4  ;;  %p337_p0 = pnand %p344_p13, %p567_p4  ;;  %s119_s29 = int_to_ptr.vmem [resolvable:$true] %s118_s29 }
  0x15   : > { %p321_p1 = scmp.ge.s32.totalorder %s510_s11, 1  ;;  %s104_s2 = scalar_lea.sflag [#allocation3], %s103_s22 }
  0x16   : > { %s512_s3 = smov 256   ;;  %s513_s4 = smov 16  }
  0x17   : > { %339 = dma.hbm_to_vmem [thread:$0]  (!%p337_p0), %s117_s30, 512, %s119_s29, %s104_s2, %s512_s3, %s512_s3, %s513_s4  }
  0x18   : > { %p126_p2 = scmp.lt.s32.totalorder %s510_s11, 3 }
  0x1a   : > { %p127_p3 = pnand %p321_p1, %p126_p2 }
  0x1b   : > { %s600_s5 = sand.u32 (!%p127_p3), 1, %s494_s7  }
  0x1c   : > { %130 = sbr.rel (%p127_p3) target bundleno = 57 (0x39), region = 24  ;;  %s322_s12 = sshll.u32 (!%p127_p3), %s600_s5, 5 }
  0x1d   : > { %s133_s13 = scalar_lea.sflag (!%p127_p3), [#allocation3], %s600_s5  ;;  %s136_s15 = scalar_lea.vmem (!%p127_p3), [#allocation2], %s322_s12 }
  0x21   : > { %481 = dma.done.wait (%p573_p8), %s133_s13, 512  }
  0x22   : > { %483 = vsyncadd (%p573_p8), %s133_s13, 4294966784  ;;  %v160_v0 = vld [vmem:[%s136_s15] sm:$0xff]  ;;  %v161_v1 = vld [vmem:[%s136_s15 + $0x8] sm:$0xff]  ;;  %s323_s16 = sshll.u32 %s600_s5, 2  ;;  %s331_s17 = sshll.u32 %s502_s9, 2  ;;  %v203_v26 = vlaneseq  ;;  %vm198_vm0 = vcmask 1040384  }
  0x23   : > { %v162_v2 = vld [vmem:[%s136_s15 + $0x10] sm:$0xff]  ;;  %v164_v3 = vrot.slane %v160_v0, 4  ;;  %v170_v4 = vrot.slane %v161_v1, 4  ;;  %v163_v5 = vld [vmem:[%s136_s15 + $0x18] sm:$0xff]  ;;  %s223_s23 = scalar_lea.hbm %s648_s1, %s331_s17  ;;  %s155_s24 = scalar_lea.vmem [#allocation5], %s323_s16 }
  0x24   : > { %v176_v6 = vrot.slane %v162_v2, 4  ;;  %v182_v7 = vrot.slane %v163_v5, 4  ;;  %s224_s25 = sshll.u32 %s155_s24, 4  ;;  %s226_s9 = sshll.u32 %s223_s23, 4  ;;  %vm205_vm1 = vcmp.lt.s32.totalorder %v203_v26, 256  ;;  %s225_s25 = int_to_ptr.vmem [resolvable:$true] %s224_s25  ;;  %s227_s9 = int_to_ptr.hbm [resolvable:$true] %s226_s9 }
  0x25   : > { %v165_v8 = vadd.f32 %v164_v3, %v160_v0  ;;  %v171_v9 = vadd.f32 %v170_v4, %v161_v1  ;;  %s210_s26 = scalar_lea.sflag [#allocation4], %s600_s5  ;;  %s442_s27 = sshra.s32 %s227_s9, 4  ;;  %s443_s27 = int_to_ptr.hbm [resolvable:$true] %s442_s27 }
  0x26   : > { %v177_v10 = vadd.f32 %v176_v6, %v162_v2  ;;  %v183_v11 = vadd.f32 %v182_v7, %v163_v5  ;;  %s444_s28 = scalar_lea.hbm %s443_s27, 4  ;;  %s448_s2 = scalar_lea.hbm %s648_s1, 8 }
  0x27   : > { %v166_v12 = vrot.slane %v165_v8, 2  ;;  %v172_v13 = vrot.slane %v171_v9, 2  ;;  %p445_p4 = scmp.ne.s32.totalorder %s443_s27, %s444_s28  ;;  %p449_p7 = scmp.lt.s32.totalorder %s443_s27, %s648_s1 }
  0x28   : > { %v178_v14 = vrot.slane %v177_v10, 2  ;;  %v184_v15 = vrot.slane %v183_v11, 2  ;;  %p450_p8 = scmp.lt.s32.totalorder %s448_s2, %s444_s28 }
  0x29   : > { %v167_v16 = vadd.f32 %v166_v12, %v165_v8  ;;  %v173_v17 = vadd.f32 %v172_v13, %v171_v9  ;;  %p446_p5 = pnand %p445_p4, %p577_p9 }
  0x2a   : > { %v179_v18 = vadd.f32 %v178_v14, %v177_v10  ;;  %v185_v19 = vadd.f32 %v184_v15, %v183_v11  ;;  %p451_p10 = por %p450_p8, %p449_p7 }
  0x2b   : > { %v168_v20 = vrot.slane %v167_v16, 1  ;;  %v174_v21 = vrot.slane %v173_v17, 1  ;;  %p447_p6 = pneg %p446_p5 }
  0x2c   : > { %v180_v22 = vrot.slane %v179_v18, 1  ;;  %v186_v23 = vrot.slane %v185_v19, 1 }
  0x2d   : > { %v169_v24 = vadd.f32 %v168_v20, %v167_v16  ;;  %v175_v25 = vadd.f32 %v174_v21, %v173_v17  ;;  %p452_p13 = pnand %p451_p10, %p447_p6 }
  0x2e   : > { %v181_v27 = vadd.f32 %v180_v22, %v179_v18  ;;  %v187_v28 = vadd.f32 %v186_v23, %v185_v19 }
  0x2f   : > { %v188_v29 = vmul.f32 0.125, %v169_v24  ;;  %v189_v30 = vmul.f32 0.125, %v175_v25 }
  0x30   : > { %v190_v31 = vmul.f32 0.125, %v181_v27  ;;  %v191_v32 = vmul.f32 0.125, %v187_v28 }
  0x31   : > { %v196_v33 = vrot.slane %v189_v30, 7 }
  0x32   : > { %v197_v34 = vrot.slane %v191_v32, 7 }
  0x33   : > { %v199_v35 = vsel %vm198_vm0, %v188_v29, %v196_v33 }
  0x34   : > { %207 = vst.msk [vmem:[%s155_s24] sm:$0x3] %vm205_vm1, %v199_v35  ;;  %v200_v36 = vsel %vm198_vm0, %v190_v31, %v197_v34 }
  0x35   : > { %208 = vst.msk [vmem:[%s155_s24 + $0x2] sm:$0x3] %vm205_vm1, %v200_v36 }
  0x36   : > { %455 = shalt.err (!%p452_p13)
}
  0x37   : > { %s514_s5 = smov 32   ;;  %s515_s12 = smov 2  }
  0x38   : > { %334 = dma.vmem_to_hbm [thread:$0]  (%p577_p9), %s225_s25, 64, %s227_s9, %s210_s26, %s514_s5, %s514_s5, %s515_s12  }
  0x39 PF: > { %s241_s13 = sand.u32 1, %s490_s6   ;;  %p341_p0 = pnand %p316_p12, %p584_p11 }
  0x3a   : > { %s242_s15 = scalar_lea.sflag [#allocation4], %s241_s13 }
  0x3b   : > { %p342_p1 = pneg %p341_p0 }
  0x3d   : > { %485 = dma.done.wait (%p342_p1), %s242_s15, 64  }
  0x3e   : > { %487 = vsyncadd (%p342_p1), %s242_s15, 4294967232  ;;  %s17_s11 = sadd.s32 1, %s510_s11   ;;  %s653_s6 = smov %s494_s7 }
  0x3f   : > { %p14_p2 = scmp.ge.s32.totalorder %s17_s11, 4   ;;  %s654_s7 = smov %s498_s8 }
  0x40   : > { %s655_s8 = smov %s582_s20  ;;  %s656_s9 = smov %s506_s10 }
  0x41   : > { %s657_s10 = smov %s659_s14  ;;  %16 = sbr.rel (!%p14_p2) target bundleno = 6 (0x6), region = 69 }
  0x46   :  { %248 = vsyncpa [#allocation3], 1 }
  0x47   :  { %250 = vsyncpa [#allocation3 + $0x1], 1 }
  0x48   :  { %251 = vsyncpa [#allocation4], 1 }
  0x49   :  { %253 = vsyncpa [#allocation4 + $0x1], 1 }

</bundles_post_ra>
